<compile_context>
chip_gen: v7x
topology: tpu7x:2x2x1
jax: 0.10.0
libtpu: 0.0.40
codegen_flags: <defaults>
</compile_context>

<pallas_src>
import functools

import jax
import jax.numpy as jnp
import numpy as np
from jax.experimental import pallas as pl
from jax.experimental.pallas import tpu as pltpu


# ----------------------------------------------------------------------------
# helpers
# ----------------------------------------------------------------------------

def _round_up(x, m):
    return ((x + m - 1) // m) * m


def _vmem_limit(estimate_bytes):
    """Explicit scoped-VMEM budget: estimate + 25% headroom, clamped to [16, 128] MiB."""
    return int(min(max(int(estimate_bytes * 1.25), 16 << 20), 128 << 20))


def _fused_batch_tile(B):
    if B <= 8 or B % 8 != 0:
        return B
    return 8


def _gate_batch_tile(B, C, elem_bytes, budget):
    """Largest divisor of B (<=8) whose double-buffered (tb, C, 128) xr+xi blocks fit."""
    best = 1
    for t in range(1, min(B, 8) + 1):
        if B % t == 0 and 4 * t * C * 128 * elem_bytes <= budget:
            best = t
    return best


def _channel_tile(C):
    if C <= 256 or C % 8 != 0:
        return C
    for t in range(256, 7, -8):
        if C % t == 0:
            return t
    return C


def _const_spec(shape, single_buffer):
    """BlockSpec for a grid-invariant operand (weights / biases)."""
    index_map = lambda *_: (0,) * len(shape)
    if single_buffer and hasattr(pl, "Buffered"):
        try:
            # Grid-invariant blocks never need double-buffering; halves weight VMEM
            # (only applied when the stacked weights are large enough to matter).
            return pl.BlockSpec(shape, index_map, pipeline_mode=pl.Buffered(1))
        except TypeError:  # pipeline_mode unsupported in this jax version
            pass
    return pl.BlockSpec(shape, index_map)


# ----------------------------------------------------------------------------
# kernels
# ----------------------------------------------------------------------------

def _gate_from_pooled(se, w1, b1, w2, b2, n_channels):
    """Stacked complex MLP + magnitude-sigmoid gate.  se: (M, 2C) = [re | im], f32."""
    h = jnp.dot(se, w1, preferred_element_type=jnp.float32) + b1       # (M, 2R)
    h = h * jax.nn.sigmoid(h)                                          # complex SiLU (component-wise)
    z = jnp.dot(h, w2, preferred_element_type=jnp.float32) + b2        # (M, 2C)
    zr = z[:, :n_channels]
    zi = z[:, n_channels:]
    mag = jnp.sqrt(zr * zr + zi * zi + 1e-9)
    return jax.nn.sigmoid(mag)                                         # (M, C)


def _fused_kernel(xr_ref, xi_ref, w1_ref, b1_ref, w2_ref, b2_ref,
                  or_ref, oi_ref, *, n_channels, inv_hw):
    # Pooled sums (cross-lane reduction).  Padded spatial lanes are zero, so a
    # plain lane-sum followed by a single 1/HW scale on the tiny pooled vector
    # is exact (no per-element divide).
    sr = jnp.sum(xr_ref[...].astype(jnp.float32), axis=2)              # (TB, C)
    si = jnp.sum(xi_ref[...].astype(jnp.float32), axis=2)
    se = jnp.concatenate([sr, si], axis=1) * inv_hw                    # (TB, 2C)
    gate = _gate_from_pooled(se, w1_ref[...], b1_ref[...],
                             w2_ref[...], b2_ref[...], n_channels)
    g = gate[:, :, None].astype(xr_ref.dtype)                          # (TB, C, 1)
    # Re-read the refs (still resident in VMEM) for the gating multiply instead
    # of keeping a long-lived f32 copy of the full tile alive across the MLP.
    or_ref[...] = (xr_ref[...] * g).astype(or_ref.dtype)
    oi_ref[...] = (xi_ref[...] * g).astype(oi_ref.dtype)


def _gate_kernel(xr_ref, xi_ref, w1_ref, b1_ref, w2_ref, b2_ref,
                 gate_ref, sr_acc, si_acc, *, n_channels, inv_hw):
    s = pl.program_id(1)

    @pl.when(s == 0)
    def _init():
        sr_acc[...] = jnp.zeros_like(sr_acc)
        si_acc[...] = jnp.zeros_like(si_acc)

    sr_acc[...] += jnp.sum(xr_ref[...].astype(jnp.float32), axis=2)
    si_acc[...] += jnp.sum(xi_ref[...].astype(jnp.float32), axis=2)

    @pl.when(s == pl.num_programs(1) - 1)
    def _finalize():
        se = jnp.concatenate([sr_acc[...], si_acc[...]], axis=1) * inv_hw
        gate = _gate_from_pooled(se, w1_ref[...], b1_ref[...],
                                 w2_ref[...], b2_ref[...], n_channels)
        gate_ref[...] = gate[:, :, None].astype(gate_ref.dtype)


def _scale_kernel(xr_ref, xi_ref, g_ref, or_ref, oi_ref):
    g = g_ref[...].astype(xr_ref.dtype)                                # (1, TC, 1)
    or_ref[...] = (xr_ref[...] * g).astype(or_ref.dtype)
    oi_ref[...] = (xi_ref[...] * g).astype(oi_ref.dtype)


# ----------------------------------------------------------------------------
# wrapper
# ----------------------------------------------------------------------------

def complex_se_block_pallas(x_r, x_i, params, *, force_split=False):
    """x_r, x_i: (B, C, H, W).  Returns (out_r, out_i) with the same shape."""
    B, C, H, W = x_r.shape
    HW = H * W
    dtype = x_r.dtype
    ebytes = jnp.dtype(dtype).itemsize
    inv_hw = 1.0 / float(HW)
    f32 = jnp.float32

    w1r, w1i, b1r, b1i, w2r, w2i, b2r, b2i = params
    R = w1r.shape[1]

    # Stacked complex weights: [xr | xi] @ [[Wr, Wi], [-Wi, Wr]] = [yr | yi].
    w1s = jnp.concatenate(
        [jnp.concatenate([w1r, w1i], axis=1),
         jnp.concatenate([-w1i, w1r], axis=1)], axis=0).astype(f32)    # (2C, 2R)
    b1s = jnp.concatenate([b1r, b1i], axis=1).astype(f32)              # (1, 2R)
    w2s = jnp.concatenate(
        [jnp.concatenate([w2r, w2i], axis=1),
         jnp.concatenate([-w2i, w2r], axis=1)], axis=0).astype(f32)    # (2R, 2C)
    b2s = jnp.concatenate([b2r, b2i], axis=1).astype(f32)              # (1, 2C)

    w_bytes = 4 * (w1s.size + b1s.size + w2s.size + b2s.size)
    single_buf_weights = w_bytes > (4 << 20)
    w_buf = 1 if single_buf_weights else 2
    w_specs = [
        _const_spec((2 * C, 2 * R), single_buf_weights),
        _const_spec((1, 2 * R), single_buf_weights),
        _const_spec((2 * R, 2 * C), single_buf_weights),
        _const_spec((1, 2 * C), single_buf_weights),
    ]

    xr = x_r.reshape(B, C, HW)
    xi = x_i.reshape(B, C, HW)

    # ---------------- path selection (explicit VMEM budget, v7x-safe) --------
    tb_f = _fused_batch_tile(B)
    hwp128 = _round_up(HW, 128)
    blk = tb_f * C * hwp128
    fused_est = (4 * 2 * blk * ebytes       # xr, xi, out_r, out_i (double-buffered)
                 + blk * 4                  # transient f32 for the pooled sum
                 + w_buf * w_bytes
                 + (2 << 20))               # slack (scratch / regalloc / descriptors)
    use_fused = (not force_split) and fused_est <= (28 << 20)

    if use_fused:
        # ---------------- fused single-pass kernel ----------------
        hwp = hwp128
        if hwp != HW:
            xr = jnp.pad(xr, ((0, 0), (0, 0), (0, hwp - HW)))
            xi = jnp.pad(xi, ((0, 0), (0, 0), (0, hwp - HW)))

        x_spec = pl.BlockSpec((tb_f, C, hwp), lambda b: (b, 0, 0))
        kernel = functools.partial(_fused_kernel, n_channels=C, inv_hw=inv_hw)
        out_r, out_i = pl.pallas_call(
            kernel,
            out_shape=(jax.ShapeDtypeStruct((B, C, hwp), dtype),
                       jax.ShapeDtypeStruct((B, C, hwp), dtype)),
            grid_spec=pltpu.PrefetchScalarGridSpec(
                num_scalar_prefetch=0,
                grid=(B // tb_f,),
                in_specs=[x_spec, x_spec] + w_specs,
                out_specs=[x_spec, x_spec],
            ),
            compiler_params=pltpu.CompilerParams(
                dimension_semantics=("parallel",),
                vmem_limit_bytes=_vmem_limit(fused_est),
            ),
        )(xr, xi, w1s, b1s, w2s, b2s)
    else:
        # ---------------- split: gate precompute + streaming multiply --------
        stream_budget = 16 << 20
        tb_g = _gate_batch_tile(B, C, ebytes, stream_budget)
        tc = _channel_tile(C)

        bound_mul = stream_budget // (4 * 2 * tc * ebytes)
        bound_gate = stream_budget // (2 * 2 * tb_g * C * ebytes)
        thw = min(bound_mul, bound_gate, 4096)
        thw = max(128, (thw // 128) * 128)           # lane-dense spatial tile
        thw = min(thw, _round_up(HW, 128))
        hwp = _round_up(HW, thw)
        n_hwt = hwp // thw

        if hwp != HW:
            xr = jnp.pad(xr, ((0, 0), (0, 0), (0, hwp - HW)))
            xi = jnp.pad(xi, ((0, 0), (0, 0), (0, hwp - HW)))

        # kernel 1: HW-tiled pooling reduction + stacked complex MLP -> gate (B,C,1)
        xg_spec = pl.BlockSpec((tb_g, C, thw), lambda b, s: (b, 0, s))
        gate_est = (2 * 2 * tb_g * C * thw * ebytes
                    + tb_g * C * thw * 4
                    + w_buf * w_bytes
                    + 4 * _round_up(tb_g, 8) * _round_up(C, 128) * 4
                    + (2 << 20))
        gate_kernel = functools.partial(_gate_kernel, n_channels=C, inv_hw=inv_hw)
        gate = pl.pallas_call(
            gate_kernel,
            out_shape=jax.ShapeDtypeStruct((B, C, 1), f32),
            grid_spec=pltpu.PrefetchScalarGridSpec(
                num_scalar_prefetch=0,
                grid=(B // tb_g, n_hwt),
                in_specs=[xg_spec, xg_spec] + w_specs,
                out_specs=pl.BlockSpec((tb_g, C, 1), lambda b, s: (b, 0, 0)),
                scratch_shapes=[pltpu.VMEM((tb_g, C), f32),
                                pltpu.VMEM((tb_g, C), f32)],
            ),
            compiler_params=pltpu.CompilerParams(
                dimension_semantics=("parallel", "arbitrary"),
                vmem_limit_bytes=_vmem_limit(gate_est),
            ),
        )(xr, xi, w1s, b1s, w2s, b2s)

        # kernel 2: streaming gating multiply on an all-parallel 3-D grid
        xs_spec = pl.BlockSpec((1, tc, thw), lambda b, c, s: (b, c, s))
        g_spec = pl.BlockSpec((1, tc, 1), lambda b, c, s: (b, c, 0))
        mul_est = (4 * 2 * tc * thw * ebytes
                   + 2 * _round_up(tc, 8) * 128 * 4
                   + (2 << 20))
        out_r, out_i = pl.pallas_call(
            _scale_kernel,
            out_shape=(jax.ShapeDtypeStruct((B, C, hwp), dtype),
                       jax.ShapeDtypeStruct((B, C, hwp), dtype)),
            grid_spec=pltpu.PrefetchScalarGridSpec(
                num_scalar_prefetch=0,
                grid=(B, C // tc, n_hwt),
                in_specs=[xs_spec, xs_spec, g_spec],
                out_specs=[xs_spec, xs_spec],
            ),
            compiler_params=pltpu.CompilerParams(
                dimension_semantics=("parallel", "parallel", "parallel"),
                vmem_limit_bytes=_vmem_limit(mul_est),
            ),
        )(xr, xi, gate)

    if hwp != HW:
        out_r = out_r[:, :, :HW]
        out_i = out_i[:, :, :HW]
    return out_r.reshape(B, C, H, W), out_i.reshape(B, C, H, W)


# ----------------------------------------------------------------------------
# parameters / reference
# ----------------------------------------------------------------------------

def make_params(in_channels, se_ratio=0.25, seed=0):
    """Deterministic synthetic parameters (shapes from the module __init__)."""
    rc = max(1, int(in_channels * se_ratio))
    keys = jax.random.split(jax.random.PRNGKey(seed), 8)
    scale1 = 1.0 / np.sqrt(in_channels)
    scale2 = 1.0 / np.sqrt(rc)
    w1r = jax.random.normal(keys[0], (in_channels, rc), jnp.float32) * scale1
    w1i = jax.random.normal(keys[1], (in_channels, rc), jnp.float32) * scale1
    b1r = jax.random.normal(keys[2], (1, rc), jnp.float32) * 0.1
    b1i = jax.random.normal(keys[3], (1, rc), jnp.float32) * 0.1
    w2r = jax.random.normal(keys[4], (rc, in_channels), jnp.float32) * scale2
    w2i = jax.random.normal(keys[5], (rc, in_channels), jnp.float32) * scale2
    b2r = jax.random.normal(keys[6], (1, in_channels), jnp.float32) * 0.1
    b2i = jax.random.normal(keys[7], (1, in_channels), jnp.float32) * 0.1
    return (w1r, w1i, b1r, b1i, w2r, w2i, b2r, b2i)


def _reference(x_r, x_i, params):
    """Pure-JAX reference mirroring the PyTorch forward."""
    w1r, w1i, b1r, b1i, w2r, w2i, b2r, b2i = params
    se_r = x_r.mean(axis=(2, 3))
    se_i = x_i.mean(axis=(2, 3))
    h_r = se_r @ w1r - se_i @ w1i + b1r
    h_i = se_r @ w1i + se_i @ w1r + b1i
    h_r = h_r * jax.nn.sigmoid(h_r)
    h_i = h_i * jax.nn.sigmoid(h_i)
    s_r = h_r @ w2r - h_i @ w2i + b2r
    s_i = h_r @ w2i + h_i @ w2r + b2i
    gate = jax.nn.sigmoid(jnp.sqrt(s_r ** 2 + s_i ** 2 + 1e-9))[:, :, None, None]
    return x_r * gate, x_i * gate


if __name__ == "__main__":
    B, C, H, W = 2, 8, 16, 16
    key = jax.random.PRNGKey(0)
    kr, ki = jax.random.split(key)
    x_r = jax.random.normal(kr, (B, C, H, W), jnp.float32)
    x_i = jax.random.normal(ki, (B, C, H, W), jnp.float32)

    params = make_params(C, se_ratio=0.25, seed=0)
    ref_r, ref_i = _reference(x_r, x_i, params)

    # Default (fused single-pass) path.
    out_r, out_i = complex_se_block_pallas(x_r, x_i, params)
    out_r = jax.block_until_ready(out_r)
    out_i = jax.block_until_ready(out_i)
    np.testing.assert_allclose(np.asarray(out_r), np.asarray(ref_r), rtol=1e-5, atol=1e-5)
    np.testing.assert_allclose(np.asarray(out_i), np.asarray(ref_i), rtol=1e-5, atol=1e-5)

    # Split fallback path (gate precompute + streaming multiply), also verified.
    sp_r, sp_i = complex_se_block_pallas(x_r, x_i, params, force_split=True)
    sp_r = jax.block_until_ready(sp_r)
    sp_i = jax.block_until_ready(sp_i)
    np.testing.assert_allclose(np.asarray(sp_r), np.asarray(ref_r), rtol=1e-5, atol=1e-5)
    np.testing.assert_allclose(np.asarray(sp_i), np.asarray(ref_i), rtol=1e-5, atol=1e-5)

    print("KERNEL_OK")
</pallas_src>

<mosaic_0001>
module attributes {stable_mosaic.version = 11 : i64} {
  func.func @_fused_kernel(%arg0: i32, %arg1: memref<2x8x256xf32, #tpu.memory_space<vmem>>, %arg2: memref<2x8x256xf32, #tpu.memory_space<vmem>>, %arg3: memref<16x4xf32, #tpu.memory_space<vmem>>, %arg4: memref<1x4xf32, #tpu.memory_space<vmem>>, %arg5: memref<4x16xf32, #tpu.memory_space<vmem>>, %arg6: memref<1x16xf32, #tpu.memory_space<vmem>>, %arg7: memref<2x8x256xf32, #tpu.memory_space<vmem>>, %arg8: memref<2x8x256xf32, #tpu.memory_space<vmem>>) attributes {dimension_semantics = [#tpu.dimension_semantics<parallel>], iteration_bounds = array<i64: 1>, scalar_prefetch = 0 : i64, scratch_operands = 0 : i64, tpu.core_type = #tpu.core_type<tc>, window_params = [{transform_indices = @transform_0, window_bounds = array<i64: 2, 8, 256>}, {transform_indices = @transform_1, window_bounds = array<i64: 2, 8, 256>}, {pipeline_mode = #tpu.pipeline_mode<synchronous>, transform_indices = @transform_2, window_bounds = array<i64: 16, 4>}, {pipeline_mode = #tpu.pipeline_mode<synchronous>, transform_indices = @transform_3, window_bounds = array<i64: 1, 4>}, {pipeline_mode = #tpu.pipeline_mode<synchronous>, transform_indices = @transform_4, window_bounds = array<i64: 4, 16>}, {pipeline_mode = #tpu.pipeline_mode<synchronous>, transform_indices = @transform_5, window_bounds = array<i64: 1, 16>}, {transform_indices = @transform_6, window_bounds = array<i64: 2, 8, 256>}, {transform_indices = @transform_7, window_bounds = array<i64: 2, 8, 256>}]} {
    %c0 = arith.constant 0 : index
    %c0_0 = arith.constant 0 : index
    %c0_1 = arith.constant 0 : index
    %0 = vector.load %arg1[%c0, %c0_0, %c0_1] : memref<2x8x256xf32, #tpu.memory_space<vmem>>, vector<2x8x256xf32>
    %cst = arith.constant dense<0.000000e+00> : vector<2x8xf32>
    %1 = vector.multi_reduction <add>, %0, %cst [2] : vector<2x8x256xf32> to vector<2x8xf32>
    %c0_2 = arith.constant 0 : index
    %c0_3 = arith.constant 0 : index
    %c0_4 = arith.constant 0 : index
    %2 = vector.load %arg2[%c0_2, %c0_3, %c0_4] : memref<2x8x256xf32, #tpu.memory_space<vmem>>, vector<2x8x256xf32>
    %cst_5 = arith.constant dense<0.000000e+00> : vector<2x8xf32>
    %3 = vector.multi_reduction <add>, %2, %cst_5 [2] : vector<2x8x256xf32> to vector<2x8xf32>
    %4 = tpu.concatenate %1, %3 in 1 : vector<2x8xf32>, vector<2x8xf32> -> vector<2x16xf32>
    %cst_6 = arith.constant 3.906250e-03 : f32
    %5 = vector.broadcast %cst_6 : f32 to vector<2x16xf32>
    %6 = arith.mulf %4, %5 : vector<2x16xf32>
    %c0_7 = arith.constant 0 : index
    %c0_8 = arith.constant 0 : index
    %7 = vector.load %arg3[%c0_7, %c0_8] : memref<16x4xf32, #tpu.memory_space<vmem>>, vector<16x4xf32>
    %c0_9 = arith.constant 0 : index
    %c0_10 = arith.constant 0 : index
    %8 = vector.load %arg4[%c0_9, %c0_10] : memref<1x4xf32, #tpu.memory_space<vmem>>, vector<1x4xf32>
    %c0_11 = arith.constant 0 : index
    %c0_12 = arith.constant 0 : index
    %9 = vector.load %arg5[%c0_11, %c0_12] : memref<4x16xf32, #tpu.memory_space<vmem>>, vector<4x16xf32>
    %c0_13 = arith.constant 0 : index
    %c0_14 = arith.constant 0 : index
    %10 = vector.load %arg6[%c0_13, %c0_14] : memref<1x16xf32, #tpu.memory_space<vmem>>, vector<1x16xf32>
    %cst_15 = arith.constant dense<0.000000e+00> : vector<2x4xf32>
    %11 = tpu.matmul %6, %7, %cst_15 {dimension_numbers = #tpu.dot_dimension_numbers<[1], [0], [0], [1], [0, 0, 1, 1], [], []>} : vector<2x16xf32>, vector<16x4xf32>, vector<2x4xf32> -> vector<2x4xf32>
    %12 = vector.broadcast %8 : vector<1x4xf32> to vector<2x4xf32>
    %13 = arith.addf %11, %12 : vector<2x4xf32>
    %14 = arith.negf %13 : vector<2x4xf32>
    %15 = math.exp %14 : vector<2x4xf32>
    %cst_16 = arith.constant 1.000000e+00 : f32
    %16 = vector.broadcast %cst_16 : f32 to vector<2x4xf32>
    %17 = arith.addf %16, %15 : vector<2x4xf32>
    %18 = arith.divf %16, %17 : vector<2x4xf32>
    %19 = arith.mulf %13, %18 : vector<2x4xf32>
    %cst_17 = arith.constant dense<0.000000e+00> : vector<2x16xf32>
    %20 = tpu.matmul %19, %9, %cst_17 {dimension_numbers = #tpu.dot_dimension_numbers<[1], [0], [0], [1], [0, 0, 1, 1], [], []>} : vector<2x4xf32>, vector<4x16xf32>, vector<2x16xf32> -> vector<2x16xf32>
    %21 = vector.broadcast %10 : vector<1x16xf32> to vector<2x16xf32>
    %22 = arith.addf %20, %21 : vector<2x16xf32>
    %23 = vector.extract_strided_slice %22 {offsets = [0, 0], sizes = [2, 8], strides = [1, 1]} : vector<2x16xf32> to vector<2x8xf32>
    %24 = vector.extract_strided_slice %22 {offsets = [0, 8], sizes = [2, 8], strides = [1, 1]} : vector<2x16xf32> to vector<2x8xf32>
    %25 = arith.mulf %23, %23 : vector<2x8xf32>
    %26 = arith.mulf %24, %24 : vector<2x8xf32>
    %27 = arith.addf %25, %26 : vector<2x8xf32>
    %cst_18 = arith.constant 9.99999971E-10 : f32
    %28 = vector.broadcast %cst_18 : f32 to vector<2x8xf32>
    %29 = arith.addf %27, %28 : vector<2x8xf32>
    %30 = math.sqrt %29 : vector<2x8xf32>
    %31 = arith.negf %30 : vector<2x8xf32>
    %32 = math.exp %31 : vector<2x8xf32>
    %cst_19 = arith.constant 1.000000e+00 : f32
    %33 = vector.broadcast %cst_19 : f32 to vector<2x8xf32>
    %34 = arith.addf %33, %32 : vector<2x8xf32>
    %35 = arith.divf %33, %34 : vector<2x8xf32>
    %36 = vector.shape_cast %35 : vector<2x8xf32> to vector<2x8x1xf32>
    %c0_20 = arith.constant 0 : index
    %c0_21 = arith.constant 0 : index
    %c0_22 = arith.constant 0 : index
    %37 = vector.load %arg1[%c0_20, %c0_21, %c0_22] : memref<2x8x256xf32, #tpu.memory_space<vmem>>, vector<2x8x256xf32>
    %38 = vector.broadcast %36 : vector<2x8x1xf32> to vector<2x8x256xf32>
    %39 = arith.mulf %37, %38 : vector<2x8x256xf32>
    %c0_23 = arith.constant 0 : index
    %c0_24 = arith.constant 0 : index
    %c0_25 = arith.constant 0 : index
    %40 = vector.load %arg7[%c0_23, %c0_24, %c0_25] : memref<2x8x256xf32, #tpu.memory_space<vmem>>, vector<2x8x256xf32>
    tpu.vector_store %arg7[%c0_23, %c0_24, %c0_25], %39 {strides = array<i32>} : memref<2x8x256xf32, #tpu.memory_space<vmem>>, vector<2x8x256xf32>,
    %c0_26 = arith.constant 0 : index
    %c0_27 = arith.constant 0 : index
    %c0_28 = arith.constant 0 : index
    %41 = vector.load %arg2[%c0_26, %c0_27, %c0_28] : memref<2x8x256xf32, #tpu.memory_space<vmem>>, vector<2x8x256xf32>
    %42 = vector.broadcast %36 : vector<2x8x1xf32> to vector<2x8x256xf32>
    %43 = arith.mulf %41, %42 : vector<2x8x256xf32>
    %c0_29 = arith.constant 0 : index
    %c0_30 = arith.constant 0 : index
    %c0_31 = arith.constant 0 : index
    %44 = vector.load %arg8[%c0_29, %c0_30, %c0_31] : memref<2x8x256xf32, #tpu.memory_space<vmem>>, vector<2x8x256xf32>
    tpu.vector_store %arg8[%c0_29, %c0_30, %c0_31], %43 {strides = array<i32>} : memref<2x8x256xf32, #tpu.memory_space<vmem>>, vector<2x8x256xf32>,
    return
  }
  func.func @transform_0(%arg0: i32) -> (i32, i32, i32) {
    %c0_i32 = arith.constant 0 : i32
    %c0_i32_0 = arith.constant 0 : i32
    %c0_i32_1 = arith.constant 0 : i32
    return %arg0, %c0_i32, %c0_i32_0 : i32, i32, i32
  }
  func.func @transform_1(%arg0: i32) -> (i32, i32, i32) {
    %c0_i32 = arith.constant 0 : i32
    %c0_i32_0 = arith.constant 0 : i32
    %c0_i32_1 = arith.constant 0 : i32
    return %arg0, %c0_i32, %c0_i32_0 : i32, i32, i32
  }
  func.func @transform_2(%arg0: i32) -> (i32, i32) {
    %c0_i32 = arith.constant 0 : i32
    %c0_i32_0 = arith.constant 0 : i32
    %c0_i32_1 = arith.constant 0 : i32
    return %c0_i32, %c0_i32_0 : i32, i32
  }
  func.func @transform_3(%arg0: i32) -> (i32, i32) {
    %c0_i32 = arith.constant 0 : i32
    %c0_i32_0 = arith.constant 0 : i32
    %c0_i32_1 = arith.constant 0 : i32
    return %c0_i32, %c0_i32_0 : i32, i32
  }
  func.func @transform_4(%arg0: i32) -> (i32, i32) {
    %c0_i32 = arith.constant 0 : i32
    %c0_i32_0 = arith.constant 0 : i32
    %c0_i32_1 = arith.constant 0 : i32
    return %c0_i32, %c0_i32_0 : i32, i32
  }
  func.func @transform_5(%arg0: i32) -> (i32, i32) {
    %c0_i32 = arith.constant 0 : i32
    %c0_i32_0 = arith.constant 0 : i32
    %c0_i32_1 = arith.constant 0 : i32
    return %c0_i32, %c0_i32_0 : i32, i32
  }
  func.func @transform_6(%arg0: i32) -> (i32, i32, i32) {
    %c0_i32 = arith.constant 0 : i32
    %c0_i32_0 = arith.constant 0 : i32
    %c0_i32_1 = arith.constant 0 : i32
    return %arg0, %c0_i32, %c0_i32_0 : i32, i32, i32
  }
  func.func @transform_7(%arg0: i32) -> (i32, i32, i32) {
    %c0_i32 = arith.constant 0 : i32
    %c0_i32_0 = arith.constant 0 : i32
    %c0_i32_1 = arith.constant 0 : i32
    return %arg0, %c0_i32, %c0_i32_0 : i32, i32, i32
  }
}

</mosaic_0001>

<bundles_post_ra>
// kernel: tpu_custom_call.1
= control target key start
LH: loop header
LB: loop body
LE: loop exit
PB: predicated region body
PF: predicated region fallthrough
CT: control target
= control target key end

     0   :  { %13 = vsyncpa [#allocation3], 0  ;;  %s683_s0 = inlined_call_operand.hbm [shape: f32[2,8,256], index: 0, kind: input, shape index: {}]   ;;  %s684_s1 = inlined_call_operand.hbm [shape: f32[2,8,256], index: 1, kind: input, shape index: {}]   ;;  %s685_s2 = inlined_call_operand.vmem [shape: f32[16,4], index: 2, kind: input, shape index: {}]   ;;  %s686_s3 = inlined_call_operand.vmem [shape: f32[1,4], index: 3, kind: input, shape index: {}]   ;;  %s687_s4 = inlined_call_operand.vmem [shape: f32[4,16], index: 4, kind: input, shape index: {}]   ;;  %s688_s5 = inlined_call_operand.vmem [shape: f32[1,16], index: 5, kind: input, shape index: {}]   ;;  %s689_s6 = inlined_call_operand.hbm [shape: f32[2,8,256], index: 6, kind: output, shape index: {0}]   ;;  %s690_s7 = inlined_call_operand.hbm [shape: f32[2,8,256], index: 7, kind: output, shape index: {1}]  }
   0x1   :  { %14 = vsyncpa [#allocation6], 0 }
   0x2   :  { %15 = vsyncpa [#allocation4], 0 }
   0x3   :  { %16 = vsyncpa [#allocation9], 0  ;;  %s513_s24 = smov [#allocation2]   ;;  %s417_s28 = scalar_lea.hbm %s683_s0, 512 }
   0x4   :  { %s22_s25 = sshll.u32 %s513_s24, 4  ;;  %p418_p0 = scmp.ne.s32.totalorder %s683_s0, %s417_s28  ;;  %s23_s25 = int_to_ptr.vmem [resolvable:$true] %s22_s25 }
   0x5   :  { %p421_p1 = scmp.lt.u32.totalorder %s417_s28, %s683_s0 }
   0x7   :  { %p423_p2 = pnand %p421_p1, %p418_p0 }
   0x9   :  { %426 = shalt.err (!%p423_p2)
}
   0xa   :  { %s427_s10 = scalar_lea.vmem %s23_s25, 512  ;;  %p432_p4 = scmp.lt.s32.totalorder %s23_s25, %s23_s25 }
   0xb   :  { %p428_p3 = scmp.ne.s32.totalorder %s23_s25, %s427_s10  ;;  %p433_p5 = scmp.lt.s32.totalorder %s427_s10, %s427_s10 }
   0xd   :  { %p434_p6 = por %p433_p5, %p432_p4 }
   0xf   :  { %p435_p7 = pnand %p434_p6, %p428_p3 }
  0x11   :  { %438 = shalt.err (!%p435_p7)
}
  0x12   :  { %s514_s11 = smov 256   ;;  %s515_s12 = smov 16  }
  0x13   :  { %28 = dma.hbm_to_vmem [thread:$0]  %s683_s0, 512, %s23_s25, [#allocation3], %s514_s11, %s514_s11, %s515_s12  }
  0x14   :  { %s516_s15 = smov [#allocation5]   ;;  %s439_s19 = scalar_lea.hbm %s684_s1, 512 }
  0x15   :  { %s34_s16 = sshll.u32 %s516_s15, 4  ;;  %p440_p8 = scmp.ne.s32.totalorder %s684_s1, %s439_s19  ;;  %s35_s16 = int_to_ptr.vmem [resolvable:$true] %s34_s16 }
  0x16   :  { %p443_p9 = scmp.lt.u32.totalorder %s439_s19, %s684_s1 }
  0x18   :  { %p445_p10 = pnand %p443_p9, %p440_p8 }
  0x1a   :  { %448 = shalt.err (!%p445_p10)
}
  0x1b   :  { %s449_s24 = scalar_lea.vmem %s35_s16, 512  ;;  %p454_p12 = scmp.lt.s32.totalorder %s35_s16, %s35_s16 }
  0x1c   :  { %p450_p11 = scmp.ne.s32.totalorder %s35_s16, %s449_s24  ;;  %p455_p13 = scmp.lt.s32.totalorder %s449_s24, %s449_s24 }
  0x1e   :  { %p456_p0 = por %p455_p13, %p454_p12 }
  0x20   :  { %p457_p1 = pnand %p456_p0, %p450_p11 }
  0x22   :  { %460 = shalt.err (!%p457_p1)
}
  0x23   :  { %40 = dma.hbm_to_vmem [thread:$0]  %s684_s1, 512, %s35_s16, [#allocation6], %s514_s11, %s514_s11, %s515_s12  }
  0x24   :  { %505 = dma.done.wait [#allocation3], 512  }
  0x25   :  { %506 = vsyncadd [#allocation3], 4294966784 }
  0x26   :  { %507 = dma.done.wait [#allocation6], 512  }
  0x27   :  { %508 = vsyncadd [#allocation6], 4294966784  ;;  %v593_v0 = vld [vmem:[#allocation5] sm:$0xff]  ;;  %v595_v1 = vld [vmem:[#allocation5 + $0x8] sm:$0xff]  ;;  %v517_v15 = vmov 0.0|0.0   ;;  %vm518_vm0 = vmmov 0   ;;  %v77_v17 = vlaneseq }
  0x28   :  { %v597_v2 = vld [vmem:[#allocation2] sm:$0xff]  ;;  %v69_v3 = vadd.f32 %v595_v1, %v593_v0  ;;  %v601_v4 = vld [vmem:[#allocation2 + $0x8] sm:$0xff]  ;;  %v603_v5 = vld [vmem:[#allocation5 + $0x10] sm:$0xff]  ;;  %394 = vmatprep.subr.bf16.mxu0 %v517_v15  ;;  %v519_v16 = vmov 0.0   ;;  %vm87_vm1 = vcmask 1041409   ;;  %vm103_vm2 = vcmask 64512  }
  0x29   :  { %v605_v6 = vld [vmem:[#allocation5 + $0x18] sm:$0xff]  ;;  %v59_v7 = vadd.f32 %v601_v4, %v597_v2  ;;  %v609_v8 = vld [vmem:[#allocation2 + $0x10] sm:$0xff]  ;;  %v106_v12 = vld [vmem:[%s685_s2] sm:$0xff]  ;;  %386 = vmatprep.mubr.msk.f32.mxu0 %vm518_vm0, %v519_v16  ;;  %389 = vmatprep.subr.mxu1 %v519_v16  ;;  %v78_v18 = vand.u32 127, %v77_v17  ;;  %v623_v19 = vshrl.u32 %v77_v17, 7  ;;  %vm117_vm3 = vcmask 130048  }
  0x2a   :  { %v611_v9 = vld [vmem:[#allocation2 + $0x18] sm:$0xff]  ;;  %70 = vadd.xlane.f32.xlu1 %v69_v3  ;;  %v72_v10 = vadd.f32 %v605_v6, %v603_v5  ;;  %v107_v13 = vld [vmem:[%s685_s2 + $0x8] sm:$0xff]  ;;  %391 = vmatprep.mubr.msk.f32.mxu1 %vm518_vm0, %v519_v16  ;;  %v109_v35 = vld [vmem:[%s687_s4] sm:$0xf]  ;;  %vm208_vm4 = vcmask 1043456   ;;  %vm204_vm5 = vcmask 31744  }
  0x2b   :  { %60 = vadd.xlane.f32.xlu0 %v59_v7  ;;  %v62_v11 = vadd.f32 %v611_v9, %v609_v8  ;;  %v395_v14 = vpack.c.bf16 %v107_v13, %v106_v12  ;;  %v92_v20 = vadd.s32 4294967288, %v78_v18  ;;  %v81_v24 = vsub.s32 %v78_v18, %v623_v19  ;;  %390 = vmatpush3.msk.msra.mxu1 %vm208_vm4, %v109_v35  ;;  %v370_v36 = vld [vmem:[%s686_s3] ss:$0 sm:$0xff]  ;;  %s520_s3 = smov 120   ;;  %s522_s13 = smov [#allocation8]  }
  0x2c   :  { %v373_v45 = vld [vmem:[%s688_s5] ss:$0 sm:$0xff]  ;;  %v304_v61 = vsub.s32 0, %v623_v19  ;;  %v311_v3 = vsub.s32 1, %v623_v19  ;;  %s521_s5 = smov [#allocation7]   ;;  %s353_s14 = sshll.u32 %s522_s13, 4  ;;  %s646_s14 = int_to_ptr.vmem [resolvable:$true] %s353_s14 }
  0x2d   :  { %396 = vmatpush3.bf16.msra.mxu0 %v395_v14  ;;  %v95_v22 = vsub.s32 %v92_v20, %v623_v19  ;;  %s341_s10 = sshll.u32 %s521_s5, 4  ;;  %s342_s10 = int_to_ptr.vmem [resolvable:$true] %s341_s10 }
  0x2e   :  { %73 = vadd.xlane.f32.xlu1 %v72_v10  ;;  %s461_s15 = scalar_lea.vmem %s342_s10, 512  ;;  %p466_p3 = scmp.lt.s32.totalorder %s342_s10, %s342_s10 }
  0x2f   :  { %63 = vadd.xlane.f32.xlu0 %v62_v11  ;;  %p462_p2 = scmp.ne.s32.totalorder %s342_s10, %s461_s15  ;;  %p467_p4 = scmp.lt.s32.totalorder %s461_s15, %s461_s15 }
  0x31   :  { %p468_p5 = por %p467_p4, %p466_p3 }
  0x33   :  { %p469_p6 = pnand %p468_p5, %p462_p2 }
  0xb7   :  { %v71_v21 = vpop.xlane.xlu1 %70 }
  0xb8   :  { %v61_v23 = vpop.xlane.xlu0 %60  ;;  %v96_v26 = vrot.slane %v71_v21, %v95_v22 }
  0xb9   :  { %v82_v29 = vrot.slane %v61_v23, %v81_v24 }
  0xbb   :  { %v74_v25 = vpop.xlane.xlu1 %73 }
  0xbc   :  { %v100_v27 = vrot.slane %v74_v25, %v95_v22  ;;  %v64_v28 = vpop.xlane.xlu0 %63 }
  0xbd   :  { %v86_v30 = vrot.slane %v64_v28, %v81_v24 }
  0xbe   :  { %v101_v31 = vsel %vm87_vm1, %v100_v27, %v96_v26 }
  0xbf   :  { %v88_v32 = vsel %vm87_vm1, %v86_v30, %v82_v29 }
  0xc0   :  { %v104_v33 = vsel %vm103_vm2, %v88_v32, %v101_v31 }
  0xc1   :  { %v105_v34 = vmul.f32 0.00390625, %v104_v33 }
  0xc3   :  { %387 = vmatmul.mubr.msk.f32.vlgmr.msra.gmra.mrb[0].mxu0 %vm117_vm3, %v105_v34 }
 0x196   :  { %v187_v37 = vpop.f32.mrb[0].mxu0 }
 0x197   :  { %v188_v38 = vadd.f32 %v370_v36, %v187_v37  ;;  %v388_v39 = vpop.f32.mrb[1].mxu0 }
 0x199   :  { %v372_v40 = vmul.f32 -1.442695, %v188_v38 }
 0x19b   :  { %407 = vpow2.f32 %v372_v40 }
 0x1a5   :  { %v408_v41 = vpop.eup %407 }
 0x1a6   :  { %v194_v42 = vadd.f32 1.0, %v408_v41 }
 0x1a8   :  { %409 = vrcp.f32 %v194_v42 }
 0x1b2   :  { %v410_v43 = vpop.eup %409 }
 0x1b3   :  { %v197_v44 = vmul.f32 %v410_v43, %v188_v38 }
 0x1b5   :  { %392 = vmatmul.mubr.msk.f32.vlgmr.msra.gmra.mrb[0].mxu1 %vm204_vm5, %v197_v44 }
 0x288   :  { %v278_v46 = vpop.f32.mrb[0].mxu1 }
 0x289   :  { %v279_v47 = vadd.f32 %v373_v45, %v278_v46  ;;  %v393_v48 = vpop.f32.mrb[1].mxu1 }
 0x28b   :  { %v282_v49 = vmul.f32 %v279_v47, %v279_v47 }
 0x28d   :  { %284 = vrot.lane.b32.xlu0 %v282_v49, %s520_s3 }
 0x2ff   :  { %v285_v50 = vpop.permute.xlu0 %284 }
 0x300   :  { %v287_v51 = vadd.f32 %v285_v50, %v282_v49 }
 0x302   :  { %v288_v52 = vadd.f32 1e-09, %v287_v51 }
 0x304   :  { %411 = vrsqrt.f32 %v288_v52  ;;  %vm291_vm6 = vcmp.eq.f32.partialorder %v288_v52, inf  ;;  %v294_v55 = vand.u32 2147483648, %v288_v52  ;;  %vm293_vm7 = vcmp.eq.f32.partialorder %v288_v52, 0.0 }
 0x30e   :  { %v412_v53 = vpop.eup %411 }
 0x30f   :  { %v290_v54 = vmul.f32 %v412_v53, %v288_v52 }
 0x311   :  { %v292_v56 = vsel %vm291_vm6, %v288_v52, %v290_v54 }
 0x312   :  { %v295_v57 = vsel %vm293_vm7, %v294_v55, %v292_v56 }
 0x313   :  { %v376_v58 = vmul.f32 -1.442695, %v295_v57 }
 0x315   :  { %413 = vpow2.f32 %v376_v58 }
 0x31f   :  { %v414_v59 = vpop.eup %413 }
 0x320   :  { %v299_v60 = vadd.f32 1.0, %v414_v59 }
 0x322   :  { %415 = vrcp.f32 %v299_v60 }
 0x32c   :  { %v416_v62 = vpop.eup %415 }
 0x32d   :  { %v305_v63 = vrot.slane %v416_v62, %v304_v61  ;;  %v312_v7 = vrot.slane %v416_v62, %v311_v3 }
 0x32f   :  { %307 = vbcast.lane.b32.xlu1 %v305_v63, 256 }
 0x333   :  { %314 = vbcast.lane.b32.xlu1 %v312_v7, 256 }
 0x3a1   :  { %v308_v10 = vpop.permute.xlu1 %307 }
 0x3a2   :  { %v316_v11 = vmul.f32 %v308_v10, %v597_v2  ;;  %v317_v12 = vmul.f32 %v308_v10, %v601_v4  ;;  %v328_v13 = vmul.f32 %v308_v10, %v593_v0  ;;  %v329_v14 = vmul.f32 %v308_v10, %v595_v1 }
 0x3a4   :  { %320 = vst [vmem:[#allocation7] sm:$0xff] %v316_v11  ;;  %321 = vst [vmem:[#allocation7 + $0x8] sm:$0xff] %v317_v12 }
 0x3a5   :  { %332 = vst [vmem:[#allocation8] sm:$0xff] %v328_v13  ;;  %333 = vst [vmem:[#allocation8 + $0x8] sm:$0xff] %v329_v14  ;;  %v315_v15 = vpop.permute.xlu1 %314 }
 0x3a6   :  { %v318_v16 = vmul.f32 %v315_v15, %v609_v8  ;;  %v319_v17 = vmul.f32 %v315_v15, %v611_v9  ;;  %v330_v2 = vmul.f32 %v315_v15, %v603_v5  ;;  %v331_v4 = vmul.f32 %v315_v15, %v605_v6 }
 0x3a8   :  { %322 = vst [vmem:[#allocation7 + $0x10] sm:$0xff] %v318_v16  ;;  %323 = vst [vmem:[#allocation7 + $0x18] sm:$0xff] %v319_v17 }
 0x3a9   :  { %334 = vst [vmem:[#allocation8 + $0x10] sm:$0xff] %v330_v2  ;;  %335 = vst [vmem:[#allocation8 + $0x18] sm:$0xff] %v331_v4 }
 0x3aa   :  { %472 = shalt.err (!%p469_p6)
}
 0x3ab   :  { %s473_s18 = scalar_lea.hbm %s689_s6, 512 }
 0x3ac   :  { %p474_p7 = scmp.ne.s32.totalorder %s689_s6, %s473_s18  ;;  %p477_p8 = scmp.lt.u32.totalorder %s473_s18, %s689_s6 }
 0x3ae   :  { %p479_p9 = pnand %p477_p8, %p474_p7 }
 0x3b0   :  { %482 = shalt.err (!%p479_p9)
}
 0x3b1   :  { %347 = dma.vmem_to_hbm [thread:$0]  %s342_s10, 512, %s689_s6, [#allocation4], %s514_s11, %s514_s11, %s515_s12  }
 0x3b2   :  { %s483_s0 = scalar_lea.vmem %s646_s14, 512  ;;  %p488_p11 = scmp.lt.s32.totalorder %s646_s14, %s646_s14 }
 0x3b3   :  { %p484_p10 = scmp.ne.s32.totalorder %s646_s14, %s483_s0  ;;  %p489_p12 = scmp.lt.s32.totalorder %s483_s0, %s483_s0 }
 0x3b5   :  { %p490_p13 = por %p489_p12, %p488_p11 }
 0x3b7   :  { %p491_p0 = pnand %p490_p13, %p484_p10 }
 0x3b9   :  { %494 = shalt.err (!%p491_p0)
}
 0x3ba   :  { %s495_s26 = scalar_lea.hbm %s690_s7, 512 }
 0x3bb   :  { %p496_p1 = scmp.ne.s32.totalorder %s690_s7, %s495_s26  ;;  %p499_p2 = scmp.lt.u32.totalorder %s495_s26, %s690_s7 }
 0x3bd   :  { %p501_p3 = pnand %p499_p2, %p496_p1 }
 0x3bf   :  { %504 = shalt.err (!%p501_p3)
}
 0x3c0   :  { %359 = dma.vmem_to_hbm [thread:$0]  %s646_s14, 512, %s690_s7, [#allocation9], %s514_s11, %s514_s11, %s515_s12  }
 0x3c1   :  { %509 = dma.done.wait [#allocation4], 512  }
 0x3c2   :  { %510 = vsyncadd [#allocation4], 4294966784 }
 0x3c3   :  { %511 = dma.done.wait [#allocation9], 512  }
 0x3c4   :  { %512 = vsyncadd [#allocation9], 4294966784 }
 0x3c5   :  { %366 = vsyncpa [#allocation3], 1 }
 0x3c6   :  { %367 = vsyncpa [#allocation6], 1 }
 0x3c7   :  { %368 = vsyncpa [#allocation4], 1 }
 0x3c8   :  { %369 = vsyncpa [#allocation9], 1 }

</bundles_post_ra>
